<compile_context>
chip_gen: v7x
topology: tpu7x:2x2x1
jax: 0.10.0
libtpu: 0.0.40
codegen_flags: <defaults>
</compile_context>

<pallas_src>
import math

import jax
import jax.numpy as jnp
from jax.experimental import pallas as pl
from jax.experimental.pallas import tpu as pltpu


def _round_up(x, m):
    return (x + m - 1) // m * m


def dqn_kernel(x_ref, w1_ref, b1_ref, w2_ref, b2_ref, w3_ref, b3_ref, o_ref):
    # Invariant: the last batch tile may contain rows past B.  Those rows hold
    # garbage but feed no cross-row reduction, and Pallas masks the out-of-bounds
    # output rows on writeback, so results for valid rows are unaffected.
    x = x_ref[...].astype(w1_ref.dtype)                       # (tb, n_in) bf16
    # Layer 1: Linear(n_in -> 128) + ReLU
    h1 = jnp.dot(x, w1_ref[...], preferred_element_type=jnp.float32)
    h1 = jnp.maximum(h1 + b1_ref[...], 0.0)
    # Layer 2: Linear(128 -> 64) + ReLU
    h2 = jnp.dot(h1.astype(w2_ref.dtype), w2_ref[...],
                 preferred_element_type=jnp.float32)
    h2 = jnp.maximum(h2 + b2_ref[...], 0.0)
    # Layer 3: Linear(64 -> n_out), no activation
    out = jnp.dot(h2.astype(w3_ref.dtype), w3_ref[...],
                  preferred_element_type=jnp.float32)
    o_ref[...] = (out + b3_ref[...]).astype(o_ref.dtype)


def dqn_forward(x, params, *, block_b=1024):
    """x: (B, n_inputs) float32. params: unpadded bf16 weights ((in,out)) + f32 biases."""
    w1, b1, w2, b2, w3, b3 = (params["w1"], params["b1"], params["w2"],
                              params["b2"], params["w3"], params["b3"])
    B, n_in = x.shape
    n_out = w3.shape[1]

    # Batch tile: multiple of 8 sublanes, capped at block_b; for large B ensure at
    # least 2 tiles so the "parallel" grid axis shards across both v7x TensorCores.
    tb = min(_round_up(block_b, 8), max(8, _round_up(pl.cdiv(B, 2), 8)))
    grid = (pl.cdiv(B, tb),)

    # Constant block index => weights/biases DMA'd once, VMEM-resident for all steps.
    def resident(a):
        nd = a.ndim
        return pl.BlockSpec(a.shape, lambda i, _nd=nd: (0,) * _nd)

    flops = 2 * B * (n_in * 128 + 128 * 64 + 64 * n_out)
    weight_bytes = sum(int(a.size) * a.dtype.itemsize
                       for a in (w1, b1, w2, b2, w3, b3))
    bytes_accessed = B * n_in * 4 + B * n_out * 4 + weight_bytes

    return pl.pallas_call(
        dqn_kernel,
        out_shape=jax.ShapeDtypeStruct((B, n_out), jnp.float32),
        grid=grid,
        in_specs=[
            pl.BlockSpec((tb, n_in), lambda i: (i, 0)),   # x: tiled over batch only
            resident(w1), resident(b1),
            resident(w2), resident(b2),
            resident(w3), resident(b3),
        ],
        out_specs=pl.BlockSpec((tb, n_out), lambda i: (i, 0)),
        compiler_params=pltpu.CompilerParams(
            dimension_semantics=("parallel",)),
        cost_estimate=pl.CostEstimate(
            flops=flops, transcendentals=0, bytes_accessed=bytes_accessed),
    )(x, w1, b1, w2, b2, w3, b3)


def init_dqn_params(key, n_inputs, *, matmul_dtype=jnp.bfloat16):
    """nn.Linear-style U(-1/sqrt(fan_in), 1/sqrt(fan_in)) init.

    Weights stored transposed vs PyTorch ((in, out)), unpadded, cast to bf16 for
    the MXU.  Biases kept f32 as (1, fan_out) rows for broadcast in the kernel.
    """
    dims = [(n_inputs, 128), (128, 64), (64, n_inputs)]
    params = {}
    for i, (fan_in, fan_out) in enumerate(dims, start=1):
        key, kw, kb = jax.random.split(key, 3)
        bound = 1.0 / math.sqrt(fan_in)
        w = jax.random.uniform(kw, (fan_in, fan_out), jnp.float32, -bound, bound)
        b = jax.random.uniform(kb, (fan_out,), jnp.float32, -bound, bound)
        params[f"w{i}"] = w.astype(matmul_dtype)
        params[f"b{i}"] = b.reshape(1, fan_out)
    return params


def dqn_reference(x, params):
    """Plain-JAX reference using the same bf16 weights / f32 bias-add path."""
    h = jnp.dot(x.astype(params["w1"].dtype), params["w1"],
                preferred_element_type=jnp.float32)
    h = jnp.maximum(h + params["b1"], 0.0)
    h = jnp.dot(h.astype(params["w2"].dtype), params["w2"],
                preferred_element_type=jnp.float32)
    h = jnp.maximum(h + params["b2"], 0.0)
    return jnp.dot(h.astype(params["w3"].dtype), params["w3"],
                   preferred_element_type=jnp.float32) + params["b3"]


if __name__ == "__main__":
    key = jax.random.PRNGKey(0)
    n_inputs = 32
    batch = 8

    kx, kp = jax.random.split(key)
    x = jax.random.normal(kx, (batch, n_inputs), dtype=jnp.float32)
    params = init_dqn_params(kp, n_inputs)

    out = dqn_forward(x, params)
    out = jax.block_until_ready(out)

    ref = dqn_reference(x, params)
    assert out.shape == (batch, n_inputs)
    assert jnp.allclose(out, ref, atol=5e-2, rtol=5e-2), float(
        jnp.max(jnp.abs(out - ref)))

    print("KERNEL_OK")
</pallas_src>

<mosaic_0001>
module attributes {stable_mosaic.version = 11 : i64} {
  func.func @dqn_kernel(%arg0: i32, %arg1: memref<8x32xf32, #tpu.memory_space<vmem>>, %arg2: memref<32x128xbf16, #tpu.memory_space<vmem>>, %arg3: memref<1x128xf32, #tpu.memory_space<vmem>>, %arg4: memref<128x64xbf16, #tpu.memory_space<vmem>>, %arg5: memref<1x64xf32, #tpu.memory_space<vmem>>, %arg6: memref<64x32xbf16, #tpu.memory_space<vmem>>, %arg7: memref<1x32xf32, #tpu.memory_space<vmem>>, %arg8: memref<8x32xf32, #tpu.memory_space<vmem>>) attributes {dimension_semantics = [#tpu.dimension_semantics<parallel>], iteration_bounds = array<i64: 1>, scalar_prefetch = 0 : i64, scratch_operands = 0 : i64, tpu.core_type = #tpu.core_type<tc>, window_params = [{transform_indices = @transform_0, window_bounds = array<i64: 8, 32>}, {pipeline_mode = #tpu.pipeline_mode<synchronous>, transform_indices = @transform_1, window_bounds = array<i64: 32, 128>}, {pipeline_mode = #tpu.pipeline_mode<synchronous>, transform_indices = @transform_2, window_bounds = array<i64: 1, 128>}, {pipeline_mode = #tpu.pipeline_mode<synchronous>, transform_indices = @transform_3, window_bounds = array<i64: 128, 64>}, {pipeline_mode = #tpu.pipeline_mode<synchronous>, transform_indices = @transform_4, window_bounds = array<i64: 1, 64>}, {pipeline_mode = #tpu.pipeline_mode<synchronous>, transform_indices = @transform_5, window_bounds = array<i64: 64, 32>}, {pipeline_mode = #tpu.pipeline_mode<synchronous>, transform_indices = @transform_6, window_bounds = array<i64: 1, 32>}, {transform_indices = @transform_7, window_bounds = array<i64: 8, 32>}]} {
    %c0 = arith.constant 0 : index
    %c0_0 = arith.constant 0 : index
    %0 = vector.load %arg1[%c0, %c0_0] : memref<8x32xf32, #tpu.memory_space<vmem>>, vector<8x32xf32>
    %1 = arith.truncf %0 : vector<8x32xf32> to vector<8x32xbf16>
    %c0_1 = arith.constant 0 : index
    %c0_2 = arith.constant 0 : index
    %2 = vector.load %arg2[%c0_1, %c0_2] : memref<32x128xbf16, #tpu.memory_space<vmem>>, vector<32x128xbf16>
    %cst = arith.constant dense<0.000000e+00> : vector<8x128xf32>
    %3 = tpu.matmul %1, %2, %cst {dimension_numbers = #tpu.dot_dimension_numbers<[1], [0], [0], [1], [0, 0, 1, 1], [], []>} : vector<8x32xbf16>, vector<32x128xbf16>, vector<8x128xf32> -> vector<8x128xf32>
    %c0_3 = arith.constant 0 : index
    %c0_4 = arith.constant 0 : index
    %4 = vector.load %arg3[%c0_3, %c0_4] : memref<1x128xf32, #tpu.memory_space<vmem>>, vector<1x128xf32>
    %5 = vector.broadcast %4 : vector<1x128xf32> to vector<8x128xf32>
    %6 = arith.addf %3, %5 : vector<8x128xf32>
    %cst_5 = arith.constant 0.000000e+00 : f32
    %7 = vector.broadcast %cst_5 : f32 to vector<8x128xf32>
    %8 = arith.maximumf %6, %7 : vector<8x128xf32>
    %9 = arith.truncf %8 : vector<8x128xf32> to vector<8x128xbf16>
    %c0_6 = arith.constant 0 : index
    %c0_7 = arith.constant 0 : index
    %10 = vector.load %arg4[%c0_6, %c0_7] : memref<128x64xbf16, #tpu.memory_space<vmem>>, vector<128x64xbf16>
    %cst_8 = arith.constant dense<0.000000e+00> : vector<8x64xf32>
    %11 = tpu.matmul %9, %10, %cst_8 {dimension_numbers = #tpu.dot_dimension_numbers<[1], [0], [0], [1], [0, 0, 1, 1], [], []>} : vector<8x128xbf16>, vector<128x64xbf16>, vector<8x64xf32> -> vector<8x64xf32>
    %c0_9 = arith.constant 0 : index
    %c0_10 = arith.constant 0 : index
    %12 = vector.load %arg5[%c0_9, %c0_10] : memref<1x64xf32, #tpu.memory_space<vmem>>, vector<1x64xf32>
    %13 = vector.broadcast %12 : vector<1x64xf32> to vector<8x64xf32>
    %14 = arith.addf %11, %13 : vector<8x64xf32>
    %cst_11 = arith.constant 0.000000e+00 : f32
    %15 = vector.broadcast %cst_11 : f32 to vector<8x64xf32>
    %16 = arith.maximumf %14, %15 : vector<8x64xf32>
    %17 = arith.truncf %16 : vector<8x64xf32> to vector<8x64xbf16>
    %c0_12 = arith.constant 0 : index
    %c0_13 = arith.constant 0 : index
    %18 = vector.load %arg6[%c0_12, %c0_13] : memref<64x32xbf16, #tpu.memory_space<vmem>>, vector<64x32xbf16>
    %cst_14 = arith.constant dense<0.000000e+00> : vector<8x32xf32>
    %19 = tpu.matmul %17, %18, %cst_14 {dimension_numbers = #tpu.dot_dimension_numbers<[1], [0], [0], [1], [0, 0, 1, 1], [], []>} : vector<8x64xbf16>, vector<64x32xbf16>, vector<8x32xf32> -> vector<8x32xf32>
    %c0_15 = arith.constant 0 : index
    %c0_16 = arith.constant 0 : index
    %20 = vector.load %arg7[%c0_15, %c0_16] : memref<1x32xf32, #tpu.memory_space<vmem>>, vector<1x32xf32>
    %21 = vector.broadcast %20 : vector<1x32xf32> to vector<8x32xf32>
    %22 = arith.addf %19, %21 : vector<8x32xf32>
    %c0_17 = arith.constant 0 : index
    %c0_18 = arith.constant 0 : index
    %23 = vector.load %arg8[%c0_17, %c0_18] : memref<8x32xf32, #tpu.memory_space<vmem>>, vector<8x32xf32>
    tpu.vector_store %arg8[%c0_17, %c0_18], %22 {strides = array<i32>} : memref<8x32xf32, #tpu.memory_space<vmem>>, vector<8x32xf32>,
    return
  }
  func.func @transform_0(%arg0: i32) -> (i32, i32) {
    %c0_i32 = arith.constant 0 : i32
    %c0_i32_0 = arith.constant 0 : i32
    return %arg0, %c0_i32 : i32, i32
  }
  func.func @transform_1(%arg0: i32) -> (i32, i32) {
    %c0_i32 = arith.constant 0 : i32
    %c0_i32_0 = arith.constant 0 : i32
    %c0_i32_1 = arith.constant 0 : i32
    return %c0_i32, %c0_i32_0 : i32, i32
  }
  func.func @transform_2(%arg0: i32) -> (i32, i32) {
    %c0_i32 = arith.constant 0 : i32
    %c0_i32_0 = arith.constant 0 : i32
    %c0_i32_1 = arith.constant 0 : i32
    return %c0_i32, %c0_i32_0 : i32, i32
  }
  func.func @transform_3(%arg0: i32) -> (i32, i32) {
    %c0_i32 = arith.constant 0 : i32
    %c0_i32_0 = arith.constant 0 : i32
    %c0_i32_1 = arith.constant 0 : i32
    return %c0_i32, %c0_i32_0 : i32, i32
  }
  func.func @transform_4(%arg0: i32) -> (i32, i32) {
    %c0_i32 = arith.constant 0 : i32
    %c0_i32_0 = arith.constant 0 : i32
    %c0_i32_1 = arith.constant 0 : i32
    return %c0_i32, %c0_i32_0 : i32, i32
  }
  func.func @transform_5(%arg0: i32) -> (i32, i32) {
    %c0_i32 = arith.constant 0 : i32
    %c0_i32_0 = arith.constant 0 : i32
    %c0_i32_1 = arith.constant 0 : i32
    return %c0_i32, %c0_i32_0 : i32, i32
  }
  func.func @transform_6(%arg0: i32) -> (i32, i32) {
    %c0_i32 = arith.constant 0 : i32
    %c0_i32_0 = arith.constant 0 : i32
    %c0_i32_1 = arith.constant 0 : i32
    return %c0_i32, %c0_i32_0 : i32, i32
  }
  func.func @transform_7(%arg0: i32) -> (i32, i32) {
    %c0_i32 = arith.constant 0 : i32
    %c0_i32_0 = arith.constant 0 : i32
    return %arg0, %c0_i32 : i32, i32
  }
}

</mosaic_0001>

<bundles_post_ra>
// kernel: tpu_custom_call.1
= control target key start
LH: loop header
LB: loop body
LE: loop exit
PB: predicated region body
PF: predicated region fallthrough
CT: control target
= control target key end

     0   :  { %v427_v1 = vmov 0.0   ;;  %vm428_vm0 = vmmov 0   ;;  %vm53_vm1 = vcmask 261120   ;;  %s541_s0 = inlined_call_operand.vmem [shape: f32[8,32], index: 0, kind: input, shape index: {}]   ;;  %s542_s1 = inlined_call_operand.vmem [shape: bf16[32,128], index: 1, kind: input, shape index: {}]   ;;  %s543_s2 = inlined_call_operand.vmem [shape: f32[1,128], index: 2, kind: input, shape index: {}]   ;;  %s544_s3 = inlined_call_operand.vmem [shape: bf16[128,64], index: 3, kind: input, shape index: {}]   ;;  %s545_s4 = inlined_call_operand.vmem [shape: f32[1,64], index: 4, kind: input, shape index: {}]   ;;  %s546_s5 = inlined_call_operand.vmem [shape: bf16[64,32], index: 5, kind: input, shape index: {}]   ;;  %s547_s6 = inlined_call_operand.vmem [shape: f32[1,32], index: 6, kind: input, shape index: {}]   ;;  %s548_s7 = inlined_call_operand.hbm [shape: f32[8,32], index: 7, kind: output, shape index: {}]  }
   0x1   :  { %v389_v0 = vld [vmem:[%s542_s1] sm:$0xff]   ;;  %346 = vmatprep.subr.bf16.mxu0 %v427_v1  ;;  %v390_v2 = vld [vmem:[%s542_s1 + $0x8] sm:$0xff]   ;;  %354 = vmatprep.subr.bf16.mxu1 %v427_v1  ;;  %v393_v7 = vld [vmem:[%s544_s3 + $0x10] sm:$0xff]  }
   0x2   :  { %347 = vmatpush3.bf16.msra.mxu0 %v389_v0  ;;  %350 = vmatprep.mubr.msk.bf16.mxu0 %vm428_vm0, %v427_v1  ;;  %v28_v3 = vld [vmem:[%s541_s0] sm:$0xff]  ;;  %v392_v6 = vld [vmem:[%s544_s3 + $0x8] sm:$0xff]  }
   0x3   :  { %348 = vmatprep.subr.bf16.mxu0 %v427_v1  ;;  %v391_v4 = vld [vmem:[%s544_s3] sm:$0xff]   ;;  %370 = vmatprep.mubr.msk.bf16.mxu1 %vm428_vm0, %v427_v1  ;;  %v29_v5 = vpack.c.bf16 %v28_v3, %v28_v3 }
   0x4   :  { %355 = vmatpush3.bf16.msra.mxu1 %v391_v4 }
   0x5   :  { %356 = vmatprep.subr.bf16.mxu1 %v427_v1 }
   0x6   :  { %349 = vmatpush3.bf16.msra.mxu0 %v390_v2 }
   0x7   :  { %374 = vmatprep.subr.bf16.mxu0 %v427_v1 }
   0x8   :  { %357 = vmatpush3.bf16.msra.mxu1 %v392_v6 }
   0x9   :  { %351 = vmatmul.mubr.msk.bf16.vlgmr.msra.gmra.mrb[0].mxu0 %vm53_vm1, %v29_v5  ;;  %358 = vmatprep.subr.bf16.mxu1 %v427_v1 }
   0xa   :  { %382 = vmatprep.mubr.msk.bf16.mxu0 %vm428_vm0, %v427_v1 }
   0xb   :  { %12 = vsyncpa [#allocation3], 0  ;;  %v394_v8 = vld [vmem:[%s544_s3 + $0x18] sm:$0xff]   ;;  %v395_v9 = vld [vmem:[%s544_s3 + $0x20] sm:$0xff]   ;;  %vm251_vm2 = vcmask 523264   ;;  %s429_s1 = smov [#allocation2]  }
   0xc   :  { %359 = vmatpush3.bf16.msra.mxu1 %v393_v7  ;;  %v396_v10 = vld [vmem:[%s544_s3 + $0x28] sm:$0xff]   ;;  %v397_v11 = vld [vmem:[%s544_s3 + $0x30] sm:$0xff]   ;;  %v398_v12 = vld [vmem:[%s544_s3 + $0x38] sm:$0xff]  }
   0xd   :  { %360 = vmatprep.subr.bf16.mxu1 %v427_v1  ;;  %v399_v13 = vld [vmem:[%s546_s5] sm:$0xff]   ;;  %v400_v14 = vld [vmem:[%s546_s5 + $0x8] sm:$0xff]   ;;  %v401_v23 = vld [vmem:[%s546_s5 + $0x10] sm:$0xff]  }
   0xe   :  { %375 = vmatpush3.bf16.msra.mxu0 %v399_v13  ;;  %v310_v15 = vld [vmem:[%s543_s2] ss:$0 sm:$0xff]  ;;  %v402_v24 = vld [vmem:[%s546_s5 + $0x18] sm:$0xff]   ;;  %s302_s5 = sshll.u32 %s429_s1, 4  ;;  %s303_s5 = int_to_ptr.vmem [resolvable:$true] %s302_s5 }
   0xf   :  { %376 = vmatprep.subr.bf16.mxu0 %v427_v1  ;;  %v314_v25 = vld [vmem:[%s545_s4] ss:$0 sm:$0xff]  ;;  %s403_s4 = scalar_lea.vmem %s303_s5, 128  ;;  %p408_p1 = scmp.lt.s32.totalorder %s303_s5, %s303_s5 }
  0x10   :  { %361 = vmatpush3.bf16.msra.mxu1 %v394_v8  ;;  %v323_v33 = vld [vmem:[%s547_s6] ss:$0 sm:$0xff]  ;;  %p404_p0 = scmp.ne.s32.totalorder %s303_s5, %s403_s4  ;;  %p409_p2 = scmp.lt.s32.totalorder %s403_s4, %s403_s4 }
  0x11   :  { %362 = vmatprep.subr.bf16.mxu1 %v427_v1 }
  0x12   :  { %377 = vmatpush3.bf16.msra.mxu0 %v400_v14  ;;  %p410_p3 = por %p409_p2, %p408_p1 }
  0x13   :  { %378 = vmatprep.subr.bf16.mxu0 %v427_v1 }
  0x14   :  { %363 = vmatpush3.bf16.msra.mxu1 %v395_v9  ;;  %p411_p4 = pnand %p410_p3, %p404_p0 }
  0x15   :  { %364 = vmatprep.subr.bf16.mxu1 %v427_v1 }
  0x16   :  { %379 = vmatpush3.bf16.msra.mxu0 %v401_v23 }
  0x17   :  { %380 = vmatprep.subr.bf16.mxu0 %v427_v1 }
  0x18   :  { %365 = vmatpush3.bf16.msra.mxu1 %v396_v10 }
  0x19   :  { %366 = vmatprep.subr.bf16.mxu1 %v427_v1 }
  0x1a   :  { %381 = vmatpush3.bf16.msra.mxu0 %v402_v24 }
  0x1c   :  { %367 = vmatpush3.bf16.msra.mxu1 %v397_v11 }
  0x1d   :  { %368 = vmatprep.subr.bf16.mxu1 %v427_v1 }
  0x20   :  { %369 = vmatpush3.bf16.msra.mxu1 %v398_v12 }
  0xdc   :  { %v91_v16 = vpop.f32.mrb[0].mxu0 }
  0xdd   :  { %v92_v17 = vadd.f32 %v310_v15, %v91_v16  ;;  %v352_v18 = vpop.f32.mrb[1].mxu0 }
  0xde   :  { %v94_v19 = vpop.f32.mrb[2].mxu0 }
  0xdf   :  { %v97_v20 = vmax.f32 %v92_v17, 0.0  ;;  %v353_v21 = vpop.f32.mrb[3].mxu0 }
  0xe1   :  { %v98_v22 = vpack.c.bf16 %v97_v20, %v97_v20 }
  0xe3   :  { %371 = vmatmul.mubr.bf16.vlgmr.msra.gmra.mrb[0].mxu1 %v98_v22 }
 0x1b6   :  { %v204_v26 = vpop.f32.mrb[0].mxu1 }
 0x1b7   :  { %v205_v27 = vadd.f32 %v314_v25, %v204_v26  ;;  %v372_v28 = vpop.f32.mrb[1].mxu1 }
 0x1b8   :  { %v207_v29 = vpop.f32.mrb[2].mxu1 }
 0x1b9   :  { %v210_v30 = vmax.f32 %v205_v27, 0.0  ;;  %v373_v31 = vpop.f32.mrb[3].mxu1 }
 0x1bb   :  { %v211_v32 = vpack.c.bf16 %v210_v30, %v210_v30 }
 0x1bd   :  { %383 = vmatmul.mubr.msk.bf16.vlgmr.msra.gmra.mrb[4].mxu0 %vm251_vm2, %v211_v32 }
 0x290   :  { %v289_v34 = vpop.f32.mrb[4].mxu0 }
 0x291   :  { %v290_v35 = vadd.f32 %v323_v33, %v289_v34  ;;  %v384_v36 = vpop.f32.mrb[5].mxu0 }
 0x292   :  { %v292_v37 = vpop.f32.mrb[6].mxu0 }
 0x293   :  { %295 = vst.msk [vmem:[#allocation2] sm:$0xff] %vm53_vm1, %v290_v35  ;;  %v385_v38 = vpop.f32.mrb[7].mxu0 }
 0x294   :  { %414 = shalt.err (!%p411_p4)
}
 0x295   :  { %s415_s6 = scalar_lea.hbm %s548_s7, 128 }
 0x296   :  { %p416_p5 = scmp.ne.s32.totalorder %s548_s7, %s415_s6  ;;  %p419_p6 = scmp.lt.u32.totalorder %s415_s6, %s548_s7 }
 0x298   :  { %p421_p7 = pnand %p419_p6, %p416_p5 }
 0x29a   :  { %424 = shalt.err (!%p421_p7)
}
 0x29b   :  { %305 = dma.vmem_to_hbm [thread:$0]  %s303_s5, 128, %s548_s7, [#allocation3]  }
 0x29c   :  { %425 = dma.done.wait [#allocation3], 128  }
 0x29d   :  { %426 = vsyncadd [#allocation3], 4294967168 }
 0x29e   :  { %309 = vsyncpa [#allocation3], 1 }

</bundles_post_ra>
